<compile_context>
chip_gen: v5e
topology: v5e:2x2
jax: 0.10.0
libtpu: 0.0.40
codegen_flags: <defaults>
</compile_context>

<pallas_src>
import numpy as np
import jax
import jax.numpy as jnp
from jax.experimental import pallas as pl
from jax.experimental.pallas import tpu as pltpu

# ---------------- configuration (small shapes consistent with the module) --------------
ENC_IMG_SIZE = 32            # stand-in image_encoder.img_size
PATCH = 4                    # encoder patch size -> Hf = Wf = 8
EMBED_DIM = 256              # SAM embedding dim (PositionEmbeddingRandom(128) -> 256)
NUM_POS_FEATS = 128
GABOR_KS = 31
GABOR_NF = 12                # 3 scales x 4 orientations
GABOR_RES = 256              # gray is resized to 256x256 before the gabor conv (fixed)
HF = ENC_IMG_SIZE // PATCH   # 8
WF = ENC_IMG_SIZE // PATCH   # 8
HW = HF * WF                 # 64
GPATCH = GABOR_RES // HF     # 32 : disjoint gray256 tile consumed per output sample
OUTW = 2 * HW                # 128 : lane-dense output width (mask | iou)
KTOT = 3 * ENC_IMG_SIZE * ENC_IMG_SIZE   # 3072 : folded contraction dim


# ---------------- gabor bank (exact replica of make_gabor_bank, numpy) -----------------
def make_gabor_bank_np(ksize, sigmas, thetas, lambd, gamma=0.5, psi=0.0):
    half = ksize // 2
    xs = np.linspace(-half, half, ksize)
    ys = xs
    y, x = np.meshgrid(ys, xs)
    kernels = []
    for sigma in sigmas:
        for theta in thetas:
            x_t = x * np.cos(theta) + y * np.sin(theta)
            y_t = -x * np.sin(theta) + y * np.cos(theta)
            gb = np.exp(-(x_t ** 2 + (gamma * y_t) ** 2) / (2 * sigma ** 2)) \
                 * np.cos(2 * np.pi * x_t / lambd + psi)
            gb -= gb.mean()
            gb /= np.linalg.norm(gb)
            kernels.append(gb)
    bank = np.stack(kernels, axis=0)[:, None, :, :]
    return bank.astype(np.float32)          # (12, 1, 31, 31)


# ---------------- trace-time linear-algebra folding (all numpy, runs once) -------------
def _bilinear_taps(src, dst):
    # taps of F.interpolate(mode='bilinear', align_corners=False, antialias=False)
    scale = src / dst
    centers = (np.arange(dst, dtype=np.float64) + 0.5) * scale - 0.5
    lo = np.floor(centers).astype(np.int64)
    frac = centers - lo
    lo_c = np.clip(lo, 0, src - 1)
    hi_c = np.clip(lo + 1, 0, src - 1)
    return lo_c, hi_c, frac


def _bilinear_matrix(dst, src):
    # (dst, src) dense matrix of the same resize (index-clamped at the border,
    # identical to F.interpolate / jax.image.resize align_corners=False edge handling
    # for this upsampling path).
    lo, hi, frac = _bilinear_taps(src, dst)
    W = np.zeros((dst, src), np.float64)
    W[np.arange(dst), lo] += 1.0 - frac
    W[np.arange(dst), hi] += frac
    return W


def build_eff32(bank, src, hf, wf):
    # Fold conv2d(gray256, bank, pad=K//2) + bilinear src->(hf,wf) into a (F, 32, 32)
    # effective filter over the DISJOINT 32x32 gray256 tile feeding each output sample.
    F_, _, K_, _ = bank.shape
    pad = K_ // 2
    P = K_ + 1                                   # 32: 31-tap support + 2-tap bilinear
    ylo, yhi, fy = _bilinear_taps(src, hf)
    xlo, xhi, fx = _bilinear_taps(src, wf)
    stride_y, stride_x = src // hf, src // wf
    # preconditions for the exact fusion (hold for 256 -> 8x8):
    # TODO(synk): other encoder feature grids would need a full-conv fallback.
    assert np.all(yhi == ylo + 1) and np.all(xhi == xlo + 1)
    assert np.allclose(fy, fy[0]) and np.allclose(fx, fx[0])
    assert stride_y == P and stride_x == P and P * hf == src and P * wf == src
    assert np.all(ylo - pad == stride_y * np.arange(hf))
    assert np.all(xlo - pad == stride_x * np.arange(wf))
    wy = np.array([1.0 - fy[0], fy[0]], np.float64)
    wx = np.array([1.0 - fx[0], fx[0]], np.float64)
    k = bank[:, 0].astype(np.float64)            # (F, 31, 31)
    eff = np.zeros((F_, P, P), np.float64)
    for ry in range(2):
        for rx in range(2):
            eff[:, ry:ry + K_, rx:rx + K_] += wy[ry] * wx[rx] * k
    return eff                                   # (F, 32, 32)


def position_embedding_np(gauss):
    # PositionEmbeddingRandom(128) on the (HF, WF) grid, flattened row-major.
    y = (np.arange(HF, dtype=np.float64) + 0.5) / HF
    x = (np.arange(WF, dtype=np.float64) + 0.5) / WF
    yg, xg = np.meshgrid(y, x, indexing='ij')
    coords = np.stack([xg, yg], axis=-1)                       # (h, w, 2)
    coords = 2.0 * coords - 1.0
    coords = (coords @ gauss) * (2.0 * np.pi)                  # (h, w, 128)
    pe = np.concatenate([np.sin(coords), np.cos(coords)], -1)  # (h, w, 256)
    return pe.reshape(HW, 2 * NUM_POS_FEATS)                   # (64, 256)


def build_folded_params(bank, gauss, w_patch, b_patch, w_gab, w_heads):
    """Fold (32->256 upsample) + gabor conv + (256->8 downsample) + patch-embed + pe +
    linear heads + IoU mean into W_total (3072, 128) and bias (128,)."""
    eff32 = build_eff32(bank, GABOR_RES, HF, WF)               # (12, 32, 32)
    U = _bilinear_matrix(GABOR_RES, ENC_IMG_SIZE)              # (256, 32) upsample map
    U_t = U.reshape(HF, GPATCH, ENC_IMG_SIZE)                  # (i, d, y)
    # G32[f,i,j,y,x] = d(gabor_feats[f,i,j]) / d(gray32[y,x])
    G32 = np.einsum('fde,idy,jex->fijyx', eff32, U_t, U_t, optimize=True)

    wg2 = w_gab.astype(np.float64) @ w_heads.astype(np.float64).T    # (12, 2)
    wp2 = w_patch.astype(np.float64) @ w_heads.astype(np.float64).T  # (48, 2)
    coef = np.array([0.2989, 0.587, 0.114], np.float64)              # grayscale mix

    # gabor path folded through the mask head (per position) and iou head (mean over p)
    g_mask = np.einsum('fijyx,f->ijyx', G32, wg2[:, 0], optimize=True)      # (8,8,32,32)
    g_iou = np.einsum('fijyx,f->yx', G32, wg2[:, 1], optimize=True) / HW    # (32,32)

    W = np.zeros((3, ENC_IMG_SIZE, ENC_IMG_SIZE, OUTW), np.float64)
    gm = g_mask.reshape(HW, ENC_IMG_SIZE, ENC_IMG_SIZE).transpose(1, 2, 0)  # (y,x,p)
    W[:, :, :, :HW] += coef[:, None, None, None] * gm[None]
    W[:, :, :, HW:] += (coef[:, None, None] * g_iou[None])[..., None]

    # encoder stand-in (patchify + linear) folded through both heads
    for ch in range(3):
        for y in range(ENC_IMG_SIZE):
            for x in range(ENC_IMG_SIZE):
                p0 = (y // PATCH) * WF + (x // PATCH)
                kk = ch * PATCH * PATCH + (y % PATCH) * PATCH + (x % PATCH)
                W[ch, y, x, p0] += wp2[kk, 0]
                W[ch, y, x, HW:] += wp2[kk, 1] / HW

    # bias: (pe + b_patch) through the heads; iou head mean folded & lane-replicated
    hb = position_embedding_np(gauss) + b_patch.reshape(1, -1).astype(np.float64)
    bias = np.zeros((OUTW,), np.float64)
    bias[:HW] = hb @ w_heads[0].astype(np.float64)
    bias[HW:] = float(np.mean(hb @ w_heads[1].astype(np.float64)))

    return (W.reshape(KTOT, OUTW).astype(np.float32), bias.astype(np.float32))


# ---------------- the fused Pallas kernel -----------------------------------------------
def _fused_kernel(x_ref, w_ref, bias_ref, out_ref):
    # x_ref   : (TMB, 3072) bf16  batch-stacked resized images (ch-major flatten)
    # w_ref   : (3072, 128) bf16  fully folded weights (gabor + encoder + heads)
    # bias_ref: (TMB, 128)  f32   (pe + b_patch) folded through the heads
    # out_ref : (TMB, 128)  f32   lanes [0,64) mask logits, [64,128) iou (replicated)
    acc = jnp.dot(x_ref[...], w_ref[...], preferred_element_type=jnp.float32)
    out_ref[...] = acc + bias_ref[...]


def fused_forward_call(x_flat, w_bf16, bias):
    B = x_flat.shape[0]
    TMB = min(128, ((B + 7) // 8) * 8)                 # sublane-aligned M tile
    B_pad = ((B + TMB - 1) // TMB) * TMB
    x_b = x_flat.astype(jnp.bfloat16)
    if B_pad != B:
        x_b = jnp.pad(x_b, ((0, B_pad - B), (0, 0)))
    bias_tile = jnp.broadcast_to(bias[None, :], (TMB, OUTW)).astype(jnp.float32)
    out = pl.pallas_call(
        _fused_kernel,
        out_shape=jax.ShapeDtypeStruct((B_pad, OUTW), jnp.float32),
        grid=(B_pad // TMB,),
        in_specs=[pl.BlockSpec((TMB, KTOT), lambda m: (m, 0)),
                  pl.BlockSpec((KTOT, OUTW), lambda m: (0, 0)),
                  pl.BlockSpec((TMB, OUTW), lambda m: (0, 0))],
        out_specs=pl.BlockSpec((TMB, OUTW), lambda m: (m, 0)),
        compiler_params=pltpu.CompilerParams(dimension_semantics=("parallel",)),
    )(x_b, w_bf16, bias_tile)
    return out[:B]


# ---------------- glue --------------------------------------------------------------------
def _resize(x, shape):
    # F.interpolate(mode='bilinear', align_corners=False, antialias=False) equivalent
    # for the two remaining (upsampling) resize paths; the only downsampling path
    # (tex -> 8x8) is folded exactly into the kernel weights.
    return jax.image.resize(x, shape, method='bilinear', antialias=False)


def forward(params, x):
    B, C, H, W = x.shape
    original_size = W
    # x = F.interpolate(x, (img_size, img_size), bilinear, align_corners=False)
    x_enc = _resize(x, (B, C, ENC_IMG_SIZE, ENC_IMG_SIZE))
    x_flat = x_enc.reshape(B, C * ENC_IMG_SIZE * ENC_IMG_SIZE)       # (B, 3072)

    out = fused_forward_call(x_flat, params['w_total'], params['bias'])  # (B, 128)

    mask = out[:, :HW].reshape(B, 1, HF, WF)
    iou_pred = out[:, HW:HW + 1]                                     # (B, 1)
    if mask.shape[-1] != original_size:
        mask = _resize(mask, (B, 1, original_size, original_size))
    return mask, iou_pred


# ---------------- main ---------------------------------------------------------------------
if __name__ == "__main__":
    key = jax.random.PRNGKey(0)
    k_x, k_pe, k_wp, k_wg, k_wm, k_wiou = jax.random.split(key, 6)

    B, C, H, W = 2, 3, 16, 16
    x = jax.random.normal(k_x, (B, C, H, W), jnp.float32)

    orientations = [0.0, np.pi / 4, np.pi / 2, 3 * np.pi / 4]
    scales = [8, 16, 32]
    bank = make_gabor_bank_np(GABOR_KS, [0.56 * s for s in scales], orientations,
                              lambd=16.0)                            # (12, 1, 31, 31)

    gauss = np.asarray(jax.random.normal(k_pe, (2, NUM_POS_FEATS), jnp.float32),
                       np.float64)
    w_patch = np.asarray(jax.random.normal(k_wp, (C * PATCH * PATCH, EMBED_DIM),
                                           jnp.float32), np.float64) * 0.05
    b_patch = np.zeros((EMBED_DIM,), np.float64)
    w_gab = np.asarray(jax.random.normal(k_wg, (GABOR_NF, EMBED_DIM), jnp.float32),
                       np.float64) * 0.1
    w_mask = np.asarray(jax.random.normal(k_wm, (1, EMBED_DIM), jnp.float32),
                        np.float64) * 0.1
    w_iou = np.asarray(jax.random.normal(k_wiou, (1, EMBED_DIM), jnp.float32),
                       np.float64) * 0.1
    w_heads = np.concatenate([w_mask, w_iou], axis=0)                # (2, 256)

    W_total, bias = build_folded_params(bank, gauss, w_patch, b_patch, w_gab, w_heads)
    params = dict(
        w_total=jnp.asarray(W_total, jnp.bfloat16),   # bf16 MXU operand, f32 accumulate
        bias=jnp.asarray(bias, jnp.float32),
    )

    mask, iou_pred = jax.jit(forward)(params, x)
    jax.block_until_ready((mask, iou_pred))
    assert mask.shape == (B, 1, W, W), mask.shape
    assert iou_pred.shape == (B, 1), iou_pred.shape
    assert jnp.all(jnp.isfinite(mask)) and jnp.all(jnp.isfinite(iou_pred))
    print("KERNEL_OK")
</pallas_src>

<mosaic_0001>
module attributes {stable_mosaic.version = 11 : i64} {
  func.func @_fused_kernel(%arg0: i32, %arg1: memref<8x3072xbf16, #tpu.memory_space<vmem>>, %arg2: memref<3072x128xbf16, #tpu.memory_space<vmem>>, %arg3: memref<8x128xf32, #tpu.memory_space<vmem>>, %arg4: memref<8x128xf32, #tpu.memory_space<vmem>>) attributes {dimension_semantics = [#tpu.dimension_semantics<parallel>], iteration_bounds = array<i64: 1>, scalar_prefetch = 0 : i64, scratch_operands = 0 : i64, tpu.core_type = #tpu.core_type<tc>, window_params = [{transform_indices = @transform_0, window_bounds = array<i64: 8, 3072>}, {pipeline_mode = #tpu.pipeline_mode<synchronous>, transform_indices = @transform_1, window_bounds = array<i64: 3072, 128>}, {pipeline_mode = #tpu.pipeline_mode<synchronous>, transform_indices = @transform_2, window_bounds = array<i64: 8, 128>}, {transform_indices = @transform_3, window_bounds = array<i64: 8, 128>}]} {
    %c0 = arith.constant 0 : index
    %c0_0 = arith.constant 0 : index
    %0 = vector.load %arg1[%c0, %c0_0] : memref<8x3072xbf16, #tpu.memory_space<vmem>>, vector<8x3072xbf16>
    %c0_1 = arith.constant 0 : index
    %c0_2 = arith.constant 0 : index
    %1 = vector.load %arg2[%c0_1, %c0_2] : memref<3072x128xbf16, #tpu.memory_space<vmem>>, vector<3072x128xbf16>
    %cst = arith.constant dense<0.000000e+00> : vector<8x128xf32>
    %2 = tpu.matmul %0, %1, %cst {dimension_numbers = #tpu.dot_dimension_numbers<[1], [0], [0], [1], [0, 0, 1, 1], [], []>} : vector<8x3072xbf16>, vector<3072x128xbf16>, vector<8x128xf32> -> vector<8x128xf32>
    %c0_3 = arith.constant 0 : index
    %c0_4 = arith.constant 0 : index
    %3 = vector.load %arg3[%c0_3, %c0_4] : memref<8x128xf32, #tpu.memory_space<vmem>>, vector<8x128xf32>
    %4 = arith.addf %2, %3 : vector<8x128xf32>
    %c0_5 = arith.constant 0 : index
    %c0_6 = arith.constant 0 : index
    %5 = vector.load %arg4[%c0_5, %c0_6] : memref<8x128xf32, #tpu.memory_space<vmem>>, vector<8x128xf32>
    tpu.vector_store %arg4[%c0_5, %c0_6], %4 {strides = array<i32>} : memref<8x128xf32, #tpu.memory_space<vmem>>, vector<8x128xf32>,
    return
  }
  func.func @transform_0(%arg0: i32) -> (i32, i32) {
    %c0_i32 = arith.constant 0 : i32
    %c0_i32_0 = arith.constant 0 : i32
    return %arg0, %c0_i32 : i32, i32
  }
  func.func @transform_1(%arg0: i32) -> (i32, i32) {
    %c0_i32 = arith.constant 0 : i32
    %c0_i32_0 = arith.constant 0 : i32
    %c0_i32_1 = arith.constant 0 : i32
    return %c0_i32, %c0_i32_0 : i32, i32
  }
  func.func @transform_2(%arg0: i32) -> (i32, i32) {
    %c0_i32 = arith.constant 0 : i32
    %c0_i32_0 = arith.constant 0 : i32
    %c0_i32_1 = arith.constant 0 : i32
    return %c0_i32, %c0_i32_0 : i32, i32
  }
  func.func @transform_3(%arg0: i32) -> (i32, i32) {
    %c0_i32 = arith.constant 0 : i32
    %c0_i32_0 = arith.constant 0 : i32
    return %arg0, %c0_i32 : i32, i32
  }
}

</mosaic_0001>

<bundles_post_ra>
// kernel: forward.1
= control target key start
LH: loop header
LB: loop body
LE: loop exit
PB: predicated region body
PF: predicated region fallthrough
CT: control target
= control target key end

     0   :  { %8 = vsyncpa [#allocation3], 0  ;;  %s2970_s15 = smov [#allocation2]   ;;  %s2971_s17 = smov 64   ;;  %s3038_s0 = inlined_call_operand.vmem [shape: bf16[8,3072], index: 0, kind: input, shape index: {}]   ;;  %s3039_s1 = inlined_call_operand.hbm [shape: bf16[3072,128], index: 1, kind: input, shape index: {}]   ;;  %s3040_s2 = inlined_call_operand.vmem [shape: f32[8,128], index: 2, kind: input, shape index: {}]   ;;  %s3041_s3 = inlined_call_operand.vmem [shape: f32[8,128], index: 3, kind: output, shape index: {}]  }
   0x1   :  { %s15_s14 = sshll.u32 %s3039_s1, 4  ;;  %s17_s16 = sshll.u32 %s2970_s15, 4  ;;  %s16_s14 = int_to_ptr.hbm [resolvable:$true] %s15_s14  ;;  %s18_s16 = int_to_ptr.vmem [resolvable:$true] %s17_s16 }
   0x2   :  { %s2972_s18 = smov 4  }
   0x3   :  { %23 = dma.hbm_to_vmem [thread:$0]  %s16_s14, 24576, %s18_s16, [#allocation3], %s2971_s17, %s2971_s17, %s2972_s18  }
   0x4   :  { %2968 = dma.done.wait [#allocation3], 24576  }
   0x5   :  { %2969 = vsyncadd [#allocation3], 4294942720  ;;  %v2756_v0 = vld [vmem:[#allocation2 + $0x38] sm:$0xff]  ;;  %v2755_v4 = vld [vmem:[#allocation2 + $0x30] sm:$0xff] }
   0x6   :  { %v2764_v1 = vld [vmem:[#allocation2 + $0x78] sm:$0xff]  ;;  %1663 = vmatpush.bf16.msra.mxu0 %v2756_v0  ;;  %v2763_v5 = vld [vmem:[#allocation2 + $0x70] sm:$0xff]  ;;  %v2754_v8 = vld [vmem:[#allocation2 + $0x28] sm:$0xff] }
   0x7   :  { %v2772_v2 = vld [vmem:[#allocation2 + $0xb8] sm:$0xff]  ;;  %1676 = vmatpush.bf16.msra.mxu1 %v2764_v1  ;;  %v2771_v6 = vld [vmem:[#allocation2 + $0xb0] sm:$0xff]  ;;  %v2762_v9 = vld [vmem:[#allocation2 + $0x68] sm:$0xff] }
   0x8   :  { %v2780_v3 = vld [vmem:[#allocation2 + $0xf8] sm:$0xff]  ;;  %1689 = vmatpush.bf16.msra.mxu2 %v2772_v2  ;;  %v2779_v7 = vld [vmem:[#allocation2 + $0xf0] sm:$0xff]  ;;  %v2770_v10 = vld [vmem:[#allocation2 + $0xa8] sm:$0xff] }
   0x9   :  { %1702 = vmatpush.bf16.msra.mxu3 %v2780_v3  ;;  %v2778_v11 = vld [vmem:[#allocation2 + $0xe8] sm:$0xff]  ;;  %v2753_v12 = vld [vmem:[#allocation2 + $0x20] sm:$0xff]  ;;  %v2752_v16 = vld [vmem:[#allocation2 + $0x18] sm:$0xff] }
   0xa   :  { %1664 = vmatpush.bf16.msra.mxu0 %v2755_v4  ;;  %v2761_v13 = vld [vmem:[#allocation2 + $0x60] sm:$0xff]  ;;  %v2760_v17 = vld [vmem:[#allocation2 + $0x58] sm:$0xff]  ;;  %v2751_v20 = vld [vmem:[#allocation2 + $0x10] sm:$0xff] }
   0xb   :  { %1677 = vmatpush.bf16.msra.mxu1 %v2763_v5  ;;  %v2769_v14 = vld [vmem:[#allocation2 + $0xa0] sm:$0xff]  ;;  %v2768_v18 = vld [vmem:[#allocation2 + $0x98] sm:$0xff]  ;;  %v2759_v21 = vld [vmem:[#allocation2 + $0x50] sm:$0xff] }
   0xc   :  { %1690 = vmatpush.bf16.msra.mxu2 %v2771_v6  ;;  %v2777_v15 = vld [vmem:[#allocation2 + $0xe0] sm:$0xff]  ;;  %v2776_v19 = vld [vmem:[#allocation2 + $0xd8] sm:$0xff]  ;;  %v2767_v22 = vld [vmem:[#allocation2 + $0x90] sm:$0xff] }
   0xd   :  { %1703 = vmatpush.bf16.msra.mxu3 %v2779_v7  ;;  %v2775_v23 = vld [vmem:[#allocation2 + $0xd0] sm:$0xff]  ;;  %v2750_v24 = vld [vmem:[#allocation2 + $0x8] sm:$0xff]  ;;  %v30_v29 = vld [vmem:[%s3038_s0] sm:$0xff] }
   0xe   :  { %1665 = vmatpush.bf16.msra.mxu0 %v2754_v8  ;;  %v2758_v25 = vld [vmem:[#allocation2 + $0x48] sm:$0xff]  ;;  %v2749_v30 = vld [vmem:[#allocation2] sm:$0xff]  ;;  %v439_v33 = vunpack.c.l.b16 %v30_v29  ;;  %v440_v37 = vunpack.c.h.b16 %v30_v29  ;;  %v2788_v38 = vld [vmem:[#allocation2 + $0x138] sm:$0xff] }
   0xf   :  { %1678 = vmatpush.bf16.msra.mxu1 %v2762_v9  ;;  %v2766_v26 = vld [vmem:[#allocation2 + $0x88] sm:$0xff]  ;;  %v2757_v31 = vld [vmem:[#allocation2 + $0x40] sm:$0xff]  ;;  %v2796_v39 = vld [vmem:[#allocation2 + $0x178] sm:$0xff] }
  0x10   :  { %1691 = vmatpush.bf16.msra.mxu2 %v2770_v10  ;;  %v2774_v27 = vld [vmem:[#allocation2 + $0xc8] sm:$0xff]  ;;  %v2765_v34 = vld [vmem:[#allocation2 + $0x80] sm:$0xff]  ;;  %v2804_v40 = vld [vmem:[#allocation2 + $0x1b8] sm:$0xff]  ;;  %v463_v43 = vpack.c.b16 %v439_v33, %v439_v33  ;;  %v464_v45 = vpack.c.b16 %v440_v37, %v440_v37 }
  0x11   :  { %1704 = vmatpush.bf16.msra.mxu3 %v2778_v11  ;;  %v31_v28 = vld [vmem:[%s3038_s0 + $0x8] sm:$0xff]  ;;  %v2773_v35 = vld [vmem:[#allocation2 + $0xc0] sm:$0xff]  ;;  %v2812_v41 = vld [vmem:[#allocation2 + $0x1f8] sm:$0xff] }
  0x12   :  { %1666 = vmatpush.bf16.msra.mxu0 %v2753_v12  ;;  %v441_v32 = vunpack.c.l.b16 %v31_v28  ;;  %v442_v36 = vunpack.c.h.b16 %v31_v28  ;;  %v2787_v46 = vld [vmem:[#allocation2 + $0x130] sm:$0xff]  ;;  %v2786_v50 = vld [vmem:[#allocation2 + $0x128] sm:$0xff]  ;;  %v2785_v54 = vld [vmem:[#allocation2 + $0x120] sm:$0xff] }
  0x13   :  { %1679 = vmatpush.bf16.msra.mxu1 %v2761_v13  ;;  %v2795_v47 = vld [vmem:[#allocation2 + $0x170] sm:$0xff]  ;;  %v2794_v51 = vld [vmem:[#allocation2 + $0x168] sm:$0xff]  ;;  %v2793_v55 = vld [vmem:[#allocation2 + $0x160] sm:$0xff] }
  0x14   :  { %1692 = vmatpush.bf16.msra.mxu2 %v2769_v14  ;;  %v465_v42 = vpack.c.b16 %v441_v32, %v441_v32  ;;  %v466_v44 = vpack.c.b16 %v442_v36, %v442_v36  ;;  %v2803_v48 = vld [vmem:[#allocation2 + $0x1b0] sm:$0xff]  ;;  %v2802_v52 = vld [vmem:[#allocation2 + $0x1a8] sm:$0xff]  ;;  %v2801_v56 = vld [vmem:[#allocation2 + $0x1a0] sm:$0xff] }
  0x15   :  { %1705 = vmatpush.bf16.msra.mxu3 %v2777_v15  ;;  %v2811_v49 = vld [vmem:[#allocation2 + $0x1f0] sm:$0xff]  ;;  %v2810_v53 = vld [vmem:[#allocation2 + $0x1e8] sm:$0xff]  ;;  %v2809_v57 = vld [vmem:[#allocation2 + $0x1e0] sm:$0xff] }
  0x16   :  { %1667 = vmatpush.bf16.msra.mxu0 %v2752_v16  ;;  %v2784_v58 = vld [vmem:[#allocation2 + $0x118] sm:$0xff]  ;;  %v2783_v62 = vld [vmem:[#allocation2 + $0x110] sm:$0xff]  ;;  %v2782_v2 = vld [vmem:[#allocation2 + $0x108] sm:$0xff] }
  0x17   :  { %1680 = vmatpush.bf16.msra.mxu1 %v2760_v17  ;;  %v2792_v59 = vld [vmem:[#allocation2 + $0x158] sm:$0xff]  ;;  %v2791_v63 = vld [vmem:[#allocation2 + $0x150] sm:$0xff]  ;;  %v2790_v3 = vld [vmem:[#allocation2 + $0x148] sm:$0xff] }
  0x18   :  { %1693 = vmatpush.bf16.msra.mxu2 %v2768_v18  ;;  %v2800_v60 = vld [vmem:[#allocation2 + $0x198] sm:$0xff]  ;;  %v2799_v0 = vld [vmem:[#allocation2 + $0x190] sm:$0xff]  ;;  %v2798_v4 = vld [vmem:[#allocation2 + $0x188] sm:$0xff] }
  0x19   :  { %1706 = vmatpush.bf16.msra.mxu3 %v2776_v19  ;;  %v2808_v61 = vld [vmem:[#allocation2 + $0x1d8] sm:$0xff]  ;;  %v2807_v1 = vld [vmem:[#allocation2 + $0x1d0] sm:$0xff]  ;;  %v2806_v5 = vld [vmem:[#allocation2 + $0x1c8] sm:$0xff] }
  0x1a   :  { %1668 = vmatpush.bf16.msra.mxu0 %v2751_v20  ;;  %v33_v6 = vld [vmem:[%s3038_s0 + $0x18] sm:$0xff]  ;;  %v32_v7 = vld [vmem:[%s3038_s0 + $0x10] sm:$0xff]  ;;  %v2781_v8 = vld [vmem:[#allocation2 + $0x100] sm:$0xff] }
  0x1b   :  { %1681 = vmatpush.bf16.msra.mxu1 %v2759_v21  ;;  %v2789_v9 = vld [vmem:[#allocation2 + $0x140] sm:$0xff]  ;;  %v445_v10 = vunpack.c.l.b16 %v33_v6  ;;  %v443_v11 = vunpack.c.l.b16 %v32_v7  ;;  %v446_v14 = vunpack.c.h.b16 %v33_v6  ;;  %v444_v15 = vunpack.c.h.b16 %v32_v7  ;;  %v2820_v16 = vld [vmem:[#allocation2 + $0x238] sm:$0xff]  ;;  %v2818_v28 = vld [vmem:[#allocation2 + $0x228] sm:$0xff] }
  0x1c   :  { %1694 = vmatpush.bf16.msra.mxu2 %v2767_v22  ;;  %v2797_v12 = vld [vmem:[#allocation2 + $0x180] sm:$0xff]  ;;  %v2828_v17 = vld [vmem:[#allocation2 + $0x278] sm:$0xff]  ;;  %v2826_v29 = vld [vmem:[#allocation2 + $0x268] sm:$0xff] }
  0x1d   :  { %1707 = vmatpush.bf16.msra.mxu3 %v2775_v23  ;;  %v2805_v13 = vld [vmem:[#allocation2 + $0x1c0] sm:$0xff]  ;;  %v2836_v18 = vld [vmem:[#allocation2 + $0x2b8] sm:$0xff]  ;;  %v469_v20 = vpack.c.b16 %v445_v10, %v445_v10  ;;  %v467_v21 = vpack.c.b16 %v443_v11, %v443_v11  ;;  %v470_v22 = vpack.c.b16 %v446_v14, %v446_v14  ;;  %v468_v23 = vpack.c.b16 %v444_v15, %v444_v15  ;;  %v2850_v6 = vld [vmem:[#allocation2 + $0x328] sm:$0xff] }
  0x1e   :  { %1669 = vmatpush.bf16.msra.mxu0 %v2750_v24  ;;  %v2844_v19 = vld [vmem:[#allocation2 + $0x2f8] sm:$0xff]  ;;  %v2819_v24 = vld [vmem:[#allocation2 + $0x230] sm:$0xff]  ;;  %v2817_v32 = vld [vmem:[#allocation2 + $0x220] sm:$0xff] }
  0x1f   :  { %1682 = vmatpush.bf16.msra.mxu1 %v2758_v25  ;;  %v2827_v25 = vld [vmem:[#allocation2 + $0x270] sm:$0xff]  ;;  %v2825_v33 = vld [vmem:[#allocation2 + $0x260] sm:$0xff]  ;;  %v2816_v36 = vld [vmem:[#allocation2 + $0x218] sm:$0xff] }
  0x20   :  { %1695 = vmatpush.bf16.msra.mxu2 %v2766_v26  ;;  %v2835_v26 = vld [vmem:[#allocation2 + $0x2b0] sm:$0xff]  ;;  %v2824_v37 = vld [vmem:[#allocation2 + $0x258] sm:$0xff]  ;;  %v2858_v7 = vld [vmem:[#allocation2 + $0x368] sm:$0xff] }
  0x21   :  { %1708 = vmatpush.bf16.msra.mxu3 %v2774_v27  ;;  %v2843_v27 = vld [vmem:[#allocation2 + $0x2f0] sm:$0xff]  ;;  %v2849_v10 = vld [vmem:[#allocation2 + $0x320] sm:$0xff]  ;;  %v2848_v14 = vld [vmem:[#allocation2 + $0x318] sm:$0xff] }
  0x22   :  { %1670 = vmatpush.bf16.msra.mxu0 %v2749_v30  ;;  %v2834_v30 = vld [vmem:[#allocation2 + $0x2a8] sm:$0xff]  ;;  %v2857_v11 = vld [vmem:[#allocation2 + $0x360] sm:$0xff]  ;;  %v2856_v15 = vld [vmem:[#allocation2 + $0x358] sm:$0xff] }
  0x23   :  { %1683 = vmatpush.bf16.msra.mxu1 %v2757_v31  ;;  %v2842_v31 = vld [vmem:[#allocation2 + $0x2e8] sm:$0xff] }
  0x24   :  { %1696 = vmatpush.bf16.msra.mxu2 %v2765_v34  ;;  %v2833_v34 = vld [vmem:[#allocation2 + $0x2a0] sm:$0xff] }
  0x25   :  { %1709 = vmatpush.bf16.msra.mxu3 %v2773_v35  ;;  %1671 = vmatmul.bf16.vlgmr.msra.gmra.mxu0 %v463_v43  ;;  %v2841_v35 = vld [vmem:[#allocation2 + $0x2e0] sm:$0xff]  ;;  %v2839_v43 = vld [vmem:[#allocation2 + $0x2d0] sm:$0xff] }
  0x26   :  { %1715 = vmatpush.bf16.msrb.mxu0 %v2788_v38  ;;  %1684 = vmatmul.bf16.vlgmr.msra.gmra.mxu1 %v464_v45  ;;  %v2832_v38 = vld [vmem:[#allocation2 + $0x298] sm:$0xff]  ;;  %v2822_v45 = vld [vmem:[#allocation2 + $0x248] sm:$0xff] }
  0x27   :  { %1728 = vmatpush.bf16.msrb.mxu1 %v2796_v39  ;;  %1697 = vmatmul.bf16.vlgmr.msra.gmra.mxu2 %v465_v42  ;;  %v2840_v39 = vld [vmem:[#allocation2 + $0x2d8] sm:$0xff]  ;;  %v2831_v42 = vld [vmem:[#allocation2 + $0x290] sm:$0xff] }
  0x28   :  { %1741 = vmatpush.bf16.msrb.mxu2 %v2804_v40  ;;  %1710 = vmatmul.bf16.vlgmr.msra.gmra.mxu3 %v466_v44  ;;  %v2815_v40 = vld [vmem:[#allocation2 + $0x210] sm:$0xff]  ;;  %v2814_v44 = vld [vmem:[#allocation2 + $0x208] sm:$0xff] }
  0x29   :  { %1754 = vmatpush.bf16.msrb.mxu3 %v2812_v41  ;;  %v2823_v41 = vld [vmem:[#allocation2 + $0x250] sm:$0xff] }
  0x2a   :  { %1716 = vmatpush.bf16.msrb.mxu0 %v2787_v46  ;;  %v2830_v46 = vld [vmem:[#allocation2 + $0x288] sm:$0xff] }
  0x2b   :  { %1729 = vmatpush.bf16.msrb.mxu1 %v2795_v47  ;;  %v2838_v47 = vld [vmem:[#allocation2 + $0x2c8] sm:$0xff] }
  0x2c   :  { %1742 = vmatpush.bf16.msrb.mxu2 %v2803_v48  ;;  %v34_v48 = vld [vmem:[%s3038_s0 + $0x20] sm:$0xff] }
  0x2d   :  { %1755 = vmatpush.bf16.msrb.mxu3 %v2811_v49  ;;  %v35_v49 = vld [vmem:[%s3038_s0 + $0x28] sm:$0xff] }
  0x2e   :  { %1717 = vmatpush.bf16.msrb.mxu0 %v2786_v50  ;;  %v2813_v50 = vld [vmem:[#allocation2 + $0x200] sm:$0xff] }
  0x2f   :  { %1730 = vmatpush.bf16.msrb.mxu1 %v2794_v51  ;;  %v2821_v51 = vld [vmem:[#allocation2 + $0x240] sm:$0xff] }
  0x30   :  { %1743 = vmatpush.bf16.msrb.mxu2 %v2802_v52  ;;  %v447_v52 = vunpack.c.l.b16 %v34_v48 }
  0x31   :  { %1756 = vmatpush.bf16.msrb.mxu3 %v2810_v53  ;;  %v449_v53 = vunpack.c.l.b16 %v35_v49 }
  0x32   :  { %1718 = vmatpush.bf16.msrb.mxu0 %v2785_v54  ;;  %v2829_v54 = vld [vmem:[#allocation2 + $0x280] sm:$0xff] }
  0x33   :  { %1731 = vmatpush.bf16.msrb.mxu1 %v2793_v55  ;;  %v2837_v55 = vld [vmem:[#allocation2 + $0x2c0] sm:$0xff] }
  0x34   :  { %1744 = vmatpush.bf16.msrb.mxu2 %v2801_v56  ;;  %v448_v56 = vunpack.c.h.b16 %v34_v48  ;;  %v2882_v48 = vld [vmem:[#allocation2 + $0x428] sm:$0xff] }
  0x35   :  { %1757 = vmatpush.bf16.msrb.mxu3 %v2809_v57  ;;  %v450_v57 = vunpack.c.h.b16 %v35_v49  ;;  %v2890_v49 = vld [vmem:[#allocation2 + $0x468] sm:$0xff] }
  0x36   :  { %1719 = vmatpush.bf16.msrb.mxu0 %v2784_v58  ;;  %v2852_v58 = vld [vmem:[#allocation2 + $0x338] sm:$0xff] }
  0x37   :  { %1732 = vmatpush.bf16.msrb.mxu1 %v2792_v59  ;;  %v2860_v59 = vld [vmem:[#allocation2 + $0x378] sm:$0xff] }
  0x38   :  { %1745 = vmatpush.bf16.msrb.mxu2 %v2800_v60  ;;  %v2868_v60 = vld [vmem:[#allocation2 + $0x3b8] sm:$0xff] }
  0x39   :  { %1758 = vmatpush.bf16.msrb.mxu3 %v2808_v61  ;;  %v2876_v61 = vld [vmem:[#allocation2 + $0x3f8] sm:$0xff] }
  0x3a   :  { %1720 = vmatpush.bf16.msrb.mxu0 %v2783_v62  ;;  %v471_v62 = vpack.c.b16 %v447_v52, %v447_v52  ;;  %v2881_v52 = vld [vmem:[#allocation2 + $0x420] sm:$0xff] }
  0x3b   :  { %1733 = vmatpush.bf16.msrb.mxu1 %v2791_v63  ;;  %v473_v63 = vpack.c.b16 %v449_v53, %v449_v53  ;;  %v2889_v53 = vld [vmem:[#allocation2 + $0x460] sm:$0xff] }
  0x3c   :  { %1746 = vmatpush.bf16.msrb.mxu2 %v2799_v0  ;;  %v472_v0 = vpack.c.b16 %v448_v56, %v448_v56  ;;  %v2880_v56 = vld [vmem:[#allocation2 + $0x418] sm:$0xff] }
  0x3d   :  { %1759 = vmatpush.bf16.msrb.mxu3 %v2807_v1  ;;  %v474_v1 = vpack.c.b16 %v450_v57, %v450_v57  ;;  %v2888_v57 = vld [vmem:[#allocation2 + $0x458] sm:$0xff] }
  0x3e   :  { %1721 = vmatpush.bf16.msrb.mxu0 %v2782_v2  ;;  %v2851_v2 = vld [vmem:[#allocation2 + $0x330] sm:$0xff] }
  0x3f   :  { %1734 = vmatpush.bf16.msrb.mxu1 %v2790_v3  ;;  %v2859_v3 = vld [vmem:[#allocation2 + $0x370] sm:$0xff] }
  0x40   :  { %1747 = vmatpush.bf16.msrb.mxu2 %v2798_v4  ;;  %v2867_v4 = vld [vmem:[#allocation2 + $0x3b0] sm:$0xff] }
  0x41   :  { %1760 = vmatpush.bf16.msrb.mxu3 %v2806_v5  ;;  %v2875_v5 = vld [vmem:[#allocation2 + $0x3f0] sm:$0xff] }
  0x42   :  { %1722 = vmatpush.bf16.msrb.mxu0 %v2781_v8  ;;  %v2866_v8 = vld [vmem:[#allocation2 + $0x3a8] sm:$0xff] }
  0x43   :  { %1735 = vmatpush.bf16.msrb.mxu1 %v2789_v9  ;;  %v2874_v9 = vld [vmem:[#allocation2 + $0x3e8] sm:$0xff] }
  0x44   :  { %1748 = vmatpush.bf16.msrb.mxu2 %v2797_v12  ;;  %v2865_v12 = vld [vmem:[#allocation2 + $0x3a0] sm:$0xff] }
  0x45   :  { %1761 = vmatpush.bf16.msrb.mxu3 %v2805_v13  ;;  %1723 = vmatmul.bf16.vlgmr.msrb.gmra.mxu0 %v467_v21  ;;  %v2873_v13 = vld [vmem:[#allocation2 + $0x3e0] sm:$0xff]  ;;  %v2871_v21 = vld [vmem:[#allocation2 + $0x3d0] sm:$0xff] }
  0x46   :  { %1767 = vmatpush.bf16.msra.mxu0 %v2820_v16  ;;  %1736 = vmatmul.bf16.vlgmr.msrb.gmra.mxu1 %v468_v23  ;;  %v2864_v16 = vld [vmem:[#allocation2 + $0x398] sm:$0xff]  ;;  %v2854_v23 = vld [vmem:[#allocation2 + $0x348] sm:$0xff] }
  0x47   :  { %1780 = vmatpush.bf16.msra.mxu1 %v2828_v17  ;;  %1749 = vmatmul.bf16.vlgmr.msrb.gmra.mxu2 %v469_v20  ;;  %v2872_v17 = vld [vmem:[#allocation2 + $0x3d8] sm:$0xff]  ;;  %v2863_v20 = vld [vmem:[#allocation2 + $0x390] sm:$0xff] }
  0x48   :  { %1793 = vmatpush.bf16.msra.mxu2 %v2836_v18  ;;  %1762 = vmatmul.bf16.vlgmr.msrb.gmra.mxu3 %v470_v22  ;;  %v2847_v18 = vld [vmem:[#allocation2 + $0x310] sm:$0xff]  ;;  %v2846_v22 = vld [vmem:[#allocation2 + $0x308] sm:$0xff] }
  0x49   :  { %1806 = vmatpush.bf16.msra.mxu3 %v2844_v19  ;;  %v2855_v19 = vld [vmem:[#allocation2 + $0x350] sm:$0xff] }
  0x4a   :  { %1768 = vmatpush.bf16.msra.mxu0 %v2819_v24  ;;  %v2862_v24 = vld [vmem:[#allocation2 + $0x388] sm:$0xff] }
  0x4b   :  { %1781 = vmatpush.bf16.msra.mxu1 %v2827_v25  ;;  %v2870_v25 = vld [vmem:[#allocation2 + $0x3c8] sm:$0xff] }
  0x4c   :  { %1794 = vmatpush.bf16.msra.mxu2 %v2835_v26  ;;  %v36_v26 = vld [vmem:[%s3038_s0 + $0x30] sm:$0xff] }
  0x4d   :  { %1807 = vmatpush.bf16.msra.mxu3 %v2843_v27  ;;  %v37_v27 = vld [vmem:[%s3038_s0 + $0x38] sm:$0xff] }
  0x4e   :  { %1769 = vmatpush.bf16.msra.mxu0 %v2818_v28  ;;  %v2845_v28 = vld [vmem:[#allocation2 + $0x300] sm:$0xff] }
  0x4f   :  { %1782 = vmatpush.bf16.msra.mxu1 %v2826_v29  ;;  %v2853_v29 = vld [vmem:[#allocation2 + $0x340] sm:$0xff] }
  0x50   :  { %1795 = vmatpush.bf16.msra.mxu2 %v2834_v30  ;;  %v451_v30 = vunpack.c.l.b16 %v36_v26 }
  0x51   :  { %1808 = vmatpush.bf16.msra.mxu3 %v2842_v31  ;;  %v453_v31 = vunpack.c.l.b16 %v37_v27 }
  0x52   :  { %1770 = vmatpush.bf16.msra.mxu0 %v2817_v32  ;;  %v2861_v32 = vld [vmem:[#allocation2 + $0x380] sm:$0xff] }
  0x53   :  { %1783 = vmatpush.bf16.msra.mxu1 %v2825_v33  ;;  %v2869_v33 = vld [vmem:[#allocation2 + $0x3c0] sm:$0xff] }
  0x54   :  { %1796 = vmatpush.bf16.msra.mxu2 %v2833_v34  ;;  %v452_v34 = vunpack.c.h.b16 %v36_v26  ;;  %v2914_v26 = vld [vmem:[#allocation2 + $0x528] sm:$0xff] }
  0x55   :  { %1809 = vmatpush.bf16.msra.mxu3 %v2841_v35  ;;  %v454_v35 = vunpack.c.h.b16 %v37_v27  ;;  %v2922_v27 = vld [vmem:[#allocation2 + $0x568] sm:$0xff] }
  0x56   :  { %1771 = vmatpush.bf16.msra.mxu0 %v2816_v36  ;;  %v2884_v36 = vld [vmem:[#allocation2 + $0x438] sm:$0xff] }
  0x57   :  { %1784 = vmatpush.bf16.msra.mxu1 %v2824_v37  ;;  %v2892_v37 = vld [vmem:[#allocation2 + $0x478] sm:$0xff] }
  0x58   :  { %1797 = vmatpush.bf16.msra.mxu2 %v2832_v38  ;;  %v2900_v38 = vld [vmem:[#allocation2 + $0x4b8] sm:$0xff] }
  0x59   :  { %1810 = vmatpush.bf16.msra.mxu3 %v2840_v39  ;;  %v2908_v39 = vld [vmem:[#allocation2 + $0x4f8] sm:$0xff] }
  0x5a   :  { %1772 = vmatpush.bf16.msra.mxu0 %v2815_v40  ;;  %v475_v40 = vpack.c.b16 %v451_v30, %v451_v30  ;;  %v426_v30 = vld [vmem:[%s3040_s2] sm:$0xff] }
  0x5b   :  { %1785 = vmatpush.bf16.msra.mxu1 %v2823_v41  ;;  %v477_v41 = vpack.c.b16 %v453_v31, %v453_v31 }
  0x5c   :  { %1798 = vmatpush.bf16.msra.mxu2 %v2831_v42  ;;  %v476_v42 = vpack.c.b16 %v452_v34, %v452_v34 }
  0x5d   :  { %1811 = vmatpush.bf16.msra.mxu3 %v2839_v43  ;;  %v478_v43 = vpack.c.b16 %v454_v35, %v454_v35 }
  0x5e   :  { %1773 = vmatpush.bf16.msra.mxu0 %v2814_v44  ;;  %v2883_v44 = vld [vmem:[#allocation2 + $0x430] sm:$0xff] }
  0x5f   :  { %1786 = vmatpush.bf16.msra.mxu1 %v2822_v45  ;;  %v2891_v45 = vld [vmem:[#allocation2 + $0x470] sm:$0xff] }
  0x60   :  { %1799 = vmatpush.bf16.msra.mxu2 %v2830_v46  ;;  %v2899_v46 = vld [vmem:[#allocation2 + $0x4b0] sm:$0xff] }
  0x61   :  { %1812 = vmatpush.bf16.msra.mxu3 %v2838_v47  ;;  %v2907_v47 = vld [vmem:[#allocation2 + $0x4f0] sm:$0xff] }
  0x62   :  { %1774 = vmatpush.bf16.msra.mxu0 %v2813_v50  ;;  %v2898_v50 = vld [vmem:[#allocation2 + $0x4a8] sm:$0xff] }
  0x63   :  { %1787 = vmatpush.bf16.msra.mxu1 %v2821_v51  ;;  %v2906_v51 = vld [vmem:[#allocation2 + $0x4e8] sm:$0xff] }
  0x64   :  { %1800 = vmatpush.bf16.msra.mxu2 %v2829_v54  ;;  %v2897_v54 = vld [vmem:[#allocation2 + $0x4a0] sm:$0xff] }
  0x65   :  { %1813 = vmatpush.bf16.msra.mxu3 %v2837_v55  ;;  %1775 = vmatmul.bf16.vlgmr.msra.gmra.mxu0 %v471_v62  ;;  %v2905_v55 = vld [vmem:[#allocation2 + $0x4e0] sm:$0xff]  ;;  %v2895_v62 = vld [vmem:[#allocation2 + $0x490] sm:$0xff] }
  0x66   :  { %1819 = vmatpush.bf16.msrb.mxu0 %v2852_v58  ;;  %1788 = vmatmul.bf16.vlgmr.msra.gmra.mxu1 %v472_v0  ;;  %v2896_v58 = vld [vmem:[#allocation2 + $0x498] sm:$0xff]  ;;  %v2878_v0 = vld [vmem:[#allocation2 + $0x408] sm:$0xff] }
  0x67   :  { %1832 = vmatpush.bf16.msrb.mxu1 %v2860_v59  ;;  %1801 = vmatmul.bf16.vlgmr.msra.gmra.mxu2 %v473_v63  ;;  %v2904_v59 = vld [vmem:[#allocation2 + $0x4d8] sm:$0xff]  ;;  %v2903_v63 = vld [vmem:[#allocation2 + $0x4d0] sm:$0xff] }
  0x68   :  { %1845 = vmatpush.bf16.msrb.mxu2 %v2868_v60  ;;  %1814 = vmatmul.bf16.vlgmr.msra.gmra.mxu3 %v474_v1  ;;  %v2879_v60 = vld [vmem:[#allocation2 + $0x410] sm:$0xff]  ;;  %v2886_v1 = vld [vmem:[#allocation2 + $0x448] sm:$0xff] }
  0x69   :  { %1858 = vmatpush.bf16.msrb.mxu3 %v2876_v61  ;;  %v2887_v61 = vld [vmem:[#allocation2 + $0x450] sm:$0xff] }
  0x6a   :  { %1820 = vmatpush.bf16.msrb.mxu0 %v2851_v2  ;;  %v2894_v2 = vld [vmem:[#allocation2 + $0x488] sm:$0xff] }
  0x6b   :  { %1833 = vmatpush.bf16.msrb.mxu1 %v2859_v3  ;;  %v2902_v3 = vld [vmem:[#allocation2 + $0x4c8] sm:$0xff] }
  0x6c   :  { %1846 = vmatpush.bf16.msrb.mxu2 %v2867_v4  ;;  %v38_v4 = vld [vmem:[%s3038_s0 + $0x40] sm:$0xff] }
  0x6d   :  { %1859 = vmatpush.bf16.msrb.mxu3 %v2875_v5  ;;  %v39_v5 = vld [vmem:[%s3038_s0 + $0x48] sm:$0xff] }
  0x6e   :  { %1821 = vmatpush.bf16.msrb.mxu0 %v2850_v6  ;;  %v2877_v6 = vld [vmem:[#allocation2 + $0x400] sm:$0xff] }
  0x6f   :  { %1834 = vmatpush.bf16.msrb.mxu1 %v2858_v7  ;;  %v2885_v7 = vld [vmem:[#allocation2 + $0x440] sm:$0xff] }
  0x70   :  { %1847 = vmatpush.bf16.msrb.mxu2 %v2866_v8  ;;  %v455_v8 = vunpack.c.l.b16 %v38_v4 }
  0x71   :  { %1860 = vmatpush.bf16.msrb.mxu3 %v2874_v9  ;;  %v457_v9 = vunpack.c.l.b16 %v39_v5 }
  0x72   :  { %1822 = vmatpush.bf16.msrb.mxu0 %v2849_v10  ;;  %v2893_v10 = vld [vmem:[#allocation2 + $0x480] sm:$0xff] }
  0x73   :  { %1835 = vmatpush.bf16.msrb.mxu1 %v2857_v11  ;;  %v2901_v11 = vld [vmem:[#allocation2 + $0x4c0] sm:$0xff] }
  0x74   :  { %1848 = vmatpush.bf16.msrb.mxu2 %v2865_v12  ;;  %v456_v12 = vunpack.c.h.b16 %v38_v4  ;;  %v2933_v4 = vld [vmem:[#allocation2 + $0x5c0] sm:$0xff] }
  0x75   :  { %1861 = vmatpush.bf16.msrb.mxu3 %v2873_v13  ;;  %v458_v13 = vunpack.c.h.b16 %v39_v5 }
  0x76   :  { %1823 = vmatpush.bf16.msrb.mxu0 %v2848_v14  ;;  %v2916_v14 = vld [vmem:[#allocation2 + $0x538] sm:$0xff] }
  0x77   :  { %1836 = vmatpush.bf16.msrb.mxu1 %v2856_v15  ;;  %v2924_v15 = vld [vmem:[#allocation2 + $0x578] sm:$0xff] }
  0x78   :  { %1849 = vmatpush.bf16.msrb.mxu2 %v2864_v16  ;;  %v2932_v16 = vld [vmem:[#allocation2 + $0x5b8] sm:$0xff] }
  0x79   :  { %1862 = vmatpush.bf16.msrb.mxu3 %v2872_v17  ;;  %v2940_v17 = vld [vmem:[#allocation2 + $0x5f8] sm:$0xff] }
  0x7a   :  { %1824 = vmatpush.bf16.msrb.mxu0 %v2847_v18  ;;  %v479_v18 = vpack.c.b16 %v455_v8, %v455_v8 }
  0x7b   :  { %1837 = vmatpush.bf16.msrb.mxu1 %v2855_v19  ;;  %v481_v19 = vpack.c.b16 %v457_v9, %v457_v9 }
  0x7c   :  { %1850 = vmatpush.bf16.msrb.mxu2 %v2863_v20  ;;  %v480_v20 = vpack.c.b16 %v456_v12, %v456_v12 }
  0x7d   :  { %1863 = vmatpush.bf16.msrb.mxu3 %v2871_v21  ;;  %v482_v21 = vpack.c.b16 %v458_v13, %v458_v13 }
  0x7e   :  { %1825 = vmatpush.bf16.msrb.mxu0 %v2846_v22  ;;  %v2915_v22 = vld [vmem:[#allocation2 + $0x530] sm:$0xff] }
  0x7f   :  { %1838 = vmatpush.bf16.msrb.mxu1 %v2854_v23  ;;  %v2923_v23 = vld [vmem:[#allocation2 + $0x570] sm:$0xff] }
  0x80   :  { %1851 = vmatpush.bf16.msrb.mxu2 %v2862_v24  ;;  %v2931_v24 = vld [vmem:[#allocation2 + $0x5b0] sm:$0xff] }
  0x81   :  { %1864 = vmatpush.bf16.msrb.mxu3 %v2870_v25  ;;  %v2939_v25 = vld [vmem:[#allocation2 + $0x5f0] sm:$0xff] }
  0x82   :  { %1826 = vmatpush.bf16.msrb.mxu0 %v2845_v28  ;;  %v2930_v28 = vld [vmem:[#allocation2 + $0x5a8] sm:$0xff] }
  0x83   :  { %1839 = vmatpush.bf16.msrb.mxu1 %v2853_v29  ;;  %v2938_v29 = vld [vmem:[#allocation2 + $0x5e8] sm:$0xff] }
  0x84   :  { %1852 = vmatpush.bf16.msrb.mxu2 %v2861_v32  ;;  %v2913_v32 = vld [vmem:[#allocation2 + $0x520] sm:$0xff] }
  0x85   :  { %1865 = vmatpush.bf16.msrb.mxu3 %v2869_v33  ;;  %1827 = vmatmul.bf16.vlgmr.msrb.gmra.mxu0 %v475_v40  ;;  %v2921_v33 = vld [vmem:[#allocation2 + $0x560] sm:$0xff]  ;;  %v2920_v40 = vld [vmem:[#allocation2 + $0x558] sm:$0xff] }
  0x86   :  { %1871 = vmatpush.bf16.msra.mxu0 %v2884_v36  ;;  %1840 = vmatmul.bf16.vlgmr.msrb.gmra.mxu1 %v476_v42  ;;  %v2929_v36 = vld [vmem:[#allocation2 + $0x5a0] sm:$0xff]  ;;  %v2936_v42 = vld [vmem:[#allocation2 + $0x5d8] sm:$0xff] }
  0x87   :  { %1884 = vmatpush.bf16.msra.mxu1 %v2892_v37  ;;  %1853 = vmatmul.bf16.vlgmr.msrb.gmra.mxu2 %v477_v41  ;;  %v2937_v37 = vld [vmem:[#allocation2 + $0x5e0] sm:$0xff]  ;;  %v2928_v41 = vld [vmem:[#allocation2 + $0x598] sm:$0xff] }
  0x88   :  { %1897 = vmatpush.bf16.msra.mxu2 %v2900_v38  ;;  %1866 = vmatmul.bf16.vlgmr.msrb.gmra.mxu3 %v478_v43 }
  0x89   :  { %1910 = vmatpush.bf16.msra.mxu3 %v2908_v39  ;;  %v2912_v39 = vld [vmem:[#allocation2 + $0x518] sm:$0xff] }
  0x8a   :  { %1872 = vmatpush.bf16.msra.mxu0 %v2883_v44 }
  0x8b   :  { %1885 = vmatpush.bf16.msra.mxu1 %v2891_v45 }
  0x8c   :  { %1898 = vmatpush.bf16.msra.mxu2 %v2899_v46 }
  0x8d   :  { %1911 = vmatpush.bf16.msra.mxu3 %v2907_v47  ;;  %v2911_v47 = vld [vmem:[#allocation2 + $0x510] sm:$0xff] }
  0x8e   :  { %1873 = vmatpush.bf16.msra.mxu0 %v2882_v48  ;;  %v2919_v48 = vld [vmem:[#allocation2 + $0x550] sm:$0xff] }
  0x8f   :  { %1886 = vmatpush.bf16.msra.mxu1 %v2890_v49 }
  0x90   :  { %1899 = vmatpush.bf16.msra.mxu2 %v2898_v50 }
  0x91   :  { %1912 = vmatpush.bf16.msra.mxu3 %v2906_v51  ;;  %v2927_v51 = vld [vmem:[#allocation2 + $0x590] sm:$0xff] }
  0x92   :  { %1874 = vmatpush.bf16.msra.mxu0 %v2881_v52  ;;  %v2935_v52 = vld [vmem:[#allocation2 + $0x5d0] sm:$0xff] }
  0x93   :  { %1887 = vmatpush.bf16.msra.mxu1 %v2889_v53  ;;  %v2910_v53 = vld [vmem:[#allocation2 + $0x508] sm:$0xff] }
  0x94   :  { %1900 = vmatpush.bf16.msra.mxu2 %v2897_v54  ;;  %v2918_v54 = vld [vmem:[#allocation2 + $0x548] sm:$0xff] }
  0x95   :  { %1913 = vmatpush.bf16.msra.mxu3 %v2905_v55  ;;  %v40_v55 = vld [vmem:[%s3038_s0 + $0x50] sm:$0xff] }
  0x96   :  { %1875 = vmatpush.bf16.msra.mxu0 %v2880_v56  ;;  %v2926_v56 = vld [vmem:[#allocation2 + $0x588] sm:$0xff] }
  0x97   :  { %1888 = vmatpush.bf16.msra.mxu1 %v2888_v57  ;;  %v2934_v57 = vld [vmem:[#allocation2 + $0x5c8] sm:$0xff] }
  0x98   :  { %1901 = vmatpush.bf16.msra.mxu2 %v2896_v58  ;;  %v41_v58 = vld [vmem:[%s3038_s0 + $0x58] sm:$0xff] }
  0x99   :  { %1914 = vmatpush.bf16.msra.mxu3 %v2904_v59 }
  0x9a   :  { %1876 = vmatpush.bf16.msra.mxu0 %v2879_v60 }
  0x9b   :  { %1889 = vmatpush.bf16.msra.mxu1 %v2887_v61  ;;  %v459_v61 = vunpack.c.l.b16 %v40_v55 }
  0x9c   :  { %1902 = vmatpush.bf16.msra.mxu2 %v2895_v62  ;;  %v460_v62 = vunpack.c.h.b16 %v40_v55 }
  0x9d   :  { %1915 = vmatpush.bf16.msra.mxu3 %v2903_v63  ;;  %v2909_v63 = vld [vmem:[#allocation2 + $0x500] sm:$0xff]  ;;  %v483_v5 = vpack.c.b16 %v459_v61, %v459_v61 }
  0x9e   :  { %1877 = vmatpush.bf16.msra.mxu0 %v2878_v0  ;;  %v2917_v0 = vld [vmem:[#allocation2 + $0x540] sm:$0xff] }
  0x9f   :  { %1890 = vmatpush.bf16.msra.mxu1 %v2886_v1  ;;  %v461_v1 = vunpack.c.l.b16 %v41_v58 }
  0xa0   :  { %1903 = vmatpush.bf16.msra.mxu2 %v2894_v2  ;;  %v462_v2 = vunpack.c.h.b16 %v41_v58 }
  0xa1   :  { %1916 = vmatpush.bf16.msra.mxu3 %v2902_v3  ;;  %v2925_v3 = vld [vmem:[#allocation2 + $0x580] sm:$0xff] }
  0xa2   :  { %1878 = vmatpush.bf16.msra.mxu0 %v2877_v6  ;;  %v1672_v31 = vpop.f32.mrf.mxu0  ;;  %v484_v6 = vpack.c.b16 %v460_v62, %v460_v62  ;;  %v486_v8 = vpack.c.b16 %v462_v2, %v462_v2 }
  0xa3   :  { %1891 = vmatpush.bf16.msra.mxu1 %v2885_v7  ;;  %v1673_v34 = vadd.f32 %v1672_v31, %v426_v30  ;;  %v1685_v35 = vpop.f32.mrf.mxu1  ;;  %v485_v7 = vpack.c.b16 %v461_v1, %v461_v1 }
  0xa4   :  { %1904 = vmatpush.bf16.msra.mxu2 %v2893_v10 }
  0xa5   :  { %1917 = vmatpush.bf16.msra.mxu3 %v2901_v11  ;;  %1879 = vmatmul.bf16.vlgmr.msra.gmra.mxu0 %v479_v18  ;;  %v1686_v38 = vadd.f32 %v1685_v35, %v1673_v34 }
  0xa6   :  { %1923 = vmatpush.bf16.msrb.mxu0 %v2916_v14  ;;  %1892 = vmatmul.bf16.vlgmr.msra.gmra.mxu1 %v480_v20 }
  0xa7   :  { %1936 = vmatpush.bf16.msrb.mxu1 %v2924_v15  ;;  %1905 = vmatmul.bf16.vlgmr.msra.gmra.mxu2 %v481_v19 }
  0xa8   :  { %1949 = vmatpush.bf16.msrb.mxu2 %v2932_v16  ;;  %1918 = vmatmul.bf16.vlgmr.msra.gmra.mxu3 %v482_v21 }
  0xa9   :  { %1962 = vmatpush.bf16.msrb.mxu3 %v2940_v17 }
  0xaa   :  { %1924 = vmatpush.bf16.msrb.mxu0 %v2915_v22  ;;  %v1698_v43 = vpop.f32.mrf.mxu2  ;;  %v1674_v46 = vpop.f32.mrf.mxu0 }
  0xab   :  { %1937 = vmatpush.bf16.msrb.mxu1 %v2923_v23  ;;  %v1699_v44 = vadd.f32 %v1698_v43, %v1686_v38  ;;  %v1711_v45 = vpop.f32.mrf.mxu3  ;;  %v1687_v50 = vpop.f32.mrf.mxu1 }
  0xac   :  { %1950 = vmatpush.bf16.msrb.mxu2 %v2931_v24 }
  0xad   :  { %1963 = vmatpush.bf16.msrb.mxu3 %v2939_v25  ;;  %v1712_v49 = vadd.f32 %v1711_v45, %v1699_v44 }
  0xae   :  { %1925 = vmatpush.bf16.msrb.mxu0 %v2914_v26 }
  0xaf   :  { %1938 = vmatpush.bf16.msrb.mxu1 %v2922_v27 }
  0xb0   :  { %1951 = vmatpush.bf16.msrb.mxu2 %v2930_v28 }
  0xb1   :  { %1964 = vmatpush.bf16.msrb.mxu3 %v2938_v29 }
  0xb2   :  { %1926 = vmatpush.bf16.msrb.mxu0 %v2913_v32  ;;  %v1700_v59 = vpop.f32.mrf.mxu2 }
  0xb3   :  { %1939 = vmatpush.bf16.msrb.mxu1 %v2921_v33  ;;  %v1713_v60 = vpop.f32.mrf.mxu3 }
  0xb4   :  { %1952 = vmatpush.bf16.msrb.mxu2 %v2929_v36 }
  0xb5   :  { %1965 = vmatpush.bf16.msrb.mxu3 %v2937_v37 }
  0xb6   :  { %1927 = vmatpush.bf16.msrb.mxu0 %v2912_v39 }
  0xb7   :  { %1940 = vmatpush.bf16.msrb.mxu1 %v2920_v40 }
  0xb8   :  { %1953 = vmatpush.bf16.msrb.mxu2 %v2928_v41 }
  0xb9   :  { %1966 = vmatpush.bf16.msrb.mxu3 %v2936_v42 }
  0xba   :  { %1928 = vmatpush.bf16.msrb.mxu0 %v2911_v47 }
  0xbb   :  { %1941 = vmatpush.bf16.msrb.mxu1 %v2919_v48 }
  0xbc   :  { %1954 = vmatpush.bf16.msrb.mxu2 %v2927_v51 }
  0xbd   :  { %1967 = vmatpush.bf16.msrb.mxu3 %v2935_v52 }
  0xbe   :  { %1929 = vmatpush.bf16.msrb.mxu0 %v2910_v53 }
  0xbf   :  { %1942 = vmatpush.bf16.msrb.mxu1 %v2918_v54 }
  0xc0   :  { %1955 = vmatpush.bf16.msrb.mxu2 %v2926_v56 }
  0xc1   :  { %1968 = vmatpush.bf16.msrb.mxu3 %v2934_v57 }
  0xc2   :  { %1930 = vmatpush.bf16.msrb.mxu0 %v2909_v63  ;;  %v1724_v9 = vpop.f32.mrf.mxu0 }
  0xc3   :  { %1943 = vmatpush.bf16.msrb.mxu1 %v2917_v0  ;;  %v1725_v10 = vadd.f32 %v1724_v9, %v1712_v49  ;;  %v1737_v11 = vpop.f32.mrf.mxu1 }
  0xc4   :  { %1956 = vmatpush.bf16.msrb.mxu2 %v2925_v3 }
  0xc5   :  { %1969 = vmatpush.bf16.msrb.mxu3 %v2933_v4  ;;  %1931 = vmatmul.bf16.vlgmr.msrb.gmra.mxu0 %v483_v5  ;;  %v1738_v12 = vadd.f32 %v1737_v11, %v1725_v10 }
  0xc6   :  { %1944 = vmatmul.bf16.vlgmr.msrb.gmra.mxu1 %v484_v6 }
  0xc7   :  { %1957 = vmatmul.bf16.vlgmr.msrb.gmra.mxu2 %v485_v7 }
  0xc8   :  { %1970 = vmatmul.bf16.vlgmr.msrb.gmra.mxu3 %v486_v8 }
  0xca   :  { %v1750_v13 = vpop.f32.mrf.mxu2  ;;  %v1726_v16 = vpop.f32.mrf.mxu0 }
  0xcb   :  { %v1751_v14 = vadd.f32 %v1750_v13, %v1738_v12  ;;  %v1763_v15 = vpop.f32.mrf.mxu3  ;;  %v1739_v18 = vpop.f32.mrf.mxu1 }
  0xcd   :  { %v1764_v17 = vadd.f32 %v1763_v15, %v1751_v14 }
  0xd2   :  { %v1752_v19 = vpop.f32.mrf.mxu2 }
  0xd3   :  { %v1765_v20 = vpop.f32.mrf.mxu3 }
  0xe2   :  { %v1776_v21 = vpop.f32.mrf.mxu0 }
  0xe3   :  { %v1777_v22 = vadd.f32 %v1776_v21, %v1764_v17  ;;  %v1789_v23 = vpop.f32.mrf.mxu1 }
  0xe5   :  { %v1790_v24 = vadd.f32 %v1789_v23, %v1777_v22 }
  0xea   :  { %v1802_v25 = vpop.f32.mrf.mxu2  ;;  %v1778_v28 = vpop.f32.mrf.mxu0 }
  0xeb   :  { %v1803_v26 = vadd.f32 %v1802_v25, %v1790_v24  ;;  %v1815_v27 = vpop.f32.mrf.mxu3  ;;  %v1791_v30 = vpop.f32.mrf.mxu1 }
  0xed   :  { %v1816_v29 = vadd.f32 %v1815_v27, %v1803_v26 }
  0xf2   :  { %v1804_v31 = vpop.f32.mrf.mxu2 }
  0xf3   :  { %v1817_v32 = vpop.f32.mrf.mxu3 }
 0x102   :  { %v1828_v33 = vpop.f32.mrf.mxu0 }
 0x103   :  { %v1841_v34 = vpop.f32.mrf.mxu1  ;;  %v1829_v44 = vadd.f32 %v1828_v33, %v1816_v29 }
 0x105   :  { %v1842_v48 = vadd.f32 %v1841_v34, %v1829_v44 }
 0x10a   :  { %v1854_v35 = vpop.f32.mrf.mxu2  ;;  %v1830_v37 = vpop.f32.mrf.mxu0 }
 0x10b   :  { %v1867_v36 = vpop.f32.mrf.mxu3  ;;  %v1843_v38 = vpop.f32.mrf.mxu1  ;;  %v1855_v49 = vadd.f32 %v1854_v35, %v1842_v48 }
 0x10d   :  { %v1868_v52 = vadd.f32 %v1867_v36, %v1855_v49 }
 0x112   :  { %v1856_v39 = vpop.f32.mrf.mxu2 }
 0x113   :  { %v1869_v40 = vpop.f32.mrf.mxu3 }
 0x122   :  { %v1880_v41 = vpop.f32.mrf.mxu0 }
 0x123   :  { %v1893_v42 = vpop.f32.mrf.mxu1  ;;  %v1881_v53 = vadd.f32 %v1880_v41, %v1868_v52 }
 0x125   :  { %v1894_v54 = vadd.f32 %v1893_v42, %v1881_v53 }
 0x12a   :  { %v1906_v43 = vpop.f32.mrf.mxu2  ;;  %v1882_v46 = vpop.f32.mrf.mxu0 }
 0x12b   :  { %v1919_v45 = vpop.f32.mrf.mxu3  ;;  %v1895_v47 = vpop.f32.mrf.mxu1  ;;  %v1907_v55 = vadd.f32 %v1906_v43, %v1894_v54 }
 0x12d   :  { %v1920_v56 = vadd.f32 %v1919_v45, %v1907_v55 }
 0x132   :  { %v1908_v50 = vpop.f32.mrf.mxu2 }
 0x133   :  { %v1921_v51 = vpop.f32.mrf.mxu3 }
 0x142   :  { %v1932_v57 = vpop.f32.mrf.mxu0 }
 0x143   :  { %v1945_v58 = vpop.f32.mrf.mxu1  ;;  %v1933_v59 = vadd.f32 %v1932_v57, %v1920_v56 }
 0x145   :  { %v1946_v60 = vadd.f32 %v1945_v58, %v1933_v59 }
 0x14a   :  { %v1958_v61 = vpop.f32.mrf.mxu2  ;;  %v1934_v0 = vpop.f32.mrf.mxu0 }
 0x14b   :  { %v1971_v62 = vpop.f32.mrf.mxu3  ;;  %v1959_v63 = vadd.f32 %v1958_v61, %v1946_v60  ;;  %v1947_v1 = vpop.f32.mrf.mxu1 }
 0x14d   :  { %v1972_v2 = vadd.f32 %v1971_v62, %v1959_v63 }
 0x14f   :  { %1975 = vst [vmem:[%s3041_s3] sm:$0xff] %v1972_v2 }
 0x152   :  { %v1960_v3 = vpop.f32.mrf.mxu2 }
 0x153   :  { %v1973_v4 = vpop.f32.mrf.mxu3 }
 0x154   :  { %1980 = vsyncpa [#allocation3], 1 }

</bundles_post_ra>
